<compile_context>
chip_gen: v7x
topology: tpu7x:2x2x1
jax: 0.10.0
libtpu: 0.0.40
codegen_flags: <defaults>
</compile_context>

<pallas_src>
import functools

import jax
import jax.numpy as jnp
from jax import lax
from jax.experimental import pallas as pl
from jax.experimental.pallas import tpu as pltpu


def _round_up(x, m):
    return (x + m - 1) // m * m


# ----------------------------------------------------------------------------
# Fused Linear (+ bias) (+ dropout) kernel.
# Grid is 1-D over M tiles; weight/bias blocks have constant index -> resident
# in VMEM, fetched once.  Kernel body: o = x @ W + b (+ dropout), one store.
# ----------------------------------------------------------------------------
def _linear_dropout_kernel(seed_ref, x_ref, w_ref, b_ref, o_ref, *,
                           apply_dropout, thresh31, inv_keep):
    y = jnp.dot(x_ref[...], w_ref[...], preferred_element_type=jnp.float32)
    y = y + b_ref[...]

    if apply_dropout:
        # Counter-based hash PRNG in plain int32 ops (wrapping mul/xor/logical
        # shifts).  Integer-domain keep test: uniform 31-bit value >= thresh31.
        i = pl.program_id(0)                      # top level, not inside a cond
        shape = y.shape
        row = lax.broadcasted_iota(jnp.int32, shape, 0)
        col = lax.broadcasted_iota(jnp.int32, shape, 1)
        h = (seed_ref[0] * jnp.int32(-1640531527)            # 0x9E3779B9
             + (i + jnp.int32(1)) * jnp.int32(-1028477387)   # 0xC2B2AE35
             + row * jnp.int32(shape[1]) + col)
        h = h ^ lax.shift_right_logical(h, 16)
        h = h * jnp.int32(-2048144789)                       # 0x85EBCA6B
        h = h ^ lax.shift_right_logical(h, 13)
        h = h * jnp.int32(-1028477387)                       # 0xC2B2AE35
        h = h ^ lax.shift_right_logical(h, 16)
        u31 = lax.shift_right_logical(h, 1)                  # uniform in [0, 2^31)
        keep = u31 >= jnp.int32(thresh31)
        y = jnp.where(keep, y * jnp.float32(inv_keep), jnp.float32(0.0))

    o_ref[...] = y


@functools.lru_cache(maxsize=None)
def _linear_dropout_call(Mp, Kp, Np, tm, drop_rate, apply_dropout):
    if apply_dropout:
        thresh31 = min(int(float(drop_rate) * float(1 << 31)), (1 << 31) - 1)
        inv_keep = 1.0 / (1.0 - float(drop_rate))
    else:
        thresh31, inv_keep = 0, 1.0
    kern = functools.partial(_linear_dropout_kernel,
                             apply_dropout=apply_dropout,
                             thresh31=thresh31, inv_keep=inv_keep)
    # VMEM budget: double-buffered x & out tiles + resident W + bias.
    vmem_need = 2 * tm * Kp * 2 + 2 * Kp * Np * 2 + 2 * tm * Np * 4 + 2 * Np * 4
    cp = dict(dimension_semantics=("parallel",))
    if vmem_need > 32 * 1024 * 1024:
        # Only for unusually large heads; v7x has 64 MiB physical VMEM per core.
        cp["vmem_limit_bytes"] = int(min(vmem_need + (4 << 20), 100 * 1024 * 1024))
    return pl.pallas_call(
        kern,
        out_shape=jax.ShapeDtypeStruct((Mp, Np), jnp.float32),
        grid_spec=pltpu.PrefetchScalarGridSpec(
            num_scalar_prefetch=1,                         # dropout seed in SMEM
            grid=(Mp // tm,),
            in_specs=[
                pl.BlockSpec((tm, Kp), lambda i, seed: (i, 0)),   # x tile
                pl.BlockSpec((Kp, Np), lambda i, seed: (0, 0)),   # resident W
                pl.BlockSpec((1, Np), lambda i, seed: (0, 0)),    # resident bias
            ],
            out_specs=pl.BlockSpec((tm, Np), lambda i, seed: (i, 0)),
        ),
        compiler_params=pltpu.CompilerParams(**cp),
    )


# ----------------------------------------------------------------------------
# label_cl module: params, one-time weight prep, forward
# ----------------------------------------------------------------------------
def make_label_cl_params(num_classes, hidden_size, seed=0):
    # Mimics nn.Linear's default init (uniform +- 1/sqrt(fan_in)).
    key = jax.random.PRNGKey(seed)
    kw, kb = jax.random.split(key)
    bound = 1.0 / (hidden_size ** 0.5)
    weight = jax.random.uniform(kw, (num_classes, hidden_size), jnp.float32,
                                -bound, bound)
    bias = jax.random.uniform(kb, (num_classes,), jnp.float32, -bound, bound)
    return {"weight": weight, "bias": bias}


def prep_label_cl_params(params):
    """One-time kernel-ready weight prep: transpose to (K, N), cast to bf16,
    pad K/N to multiples of 128.  Done once at init, NOT per forward call."""
    w = params["weight"]                    # (num_classes, hidden)
    b = params["bias"]
    N, K = w.shape
    Kp, Np = _round_up(K, 128), _round_up(N, 128)
    w_kn = jnp.pad(w.T.astype(jnp.bfloat16), ((0, Kp - K), (0, Np - N)))
    b_row = jnp.pad(b.astype(jnp.float32), (0, Np - N)).reshape(1, Np)
    return w_kn, b_row


@functools.partial(jax.jit,
                   static_argnames=("num_classes", "drop_rate", "training"))
def label_cl_forward(x, w_kn, b_row, seed, *, num_classes, drop_rate,
                     training=False):
    """== label_cl.forward: x -> dropout1(hidden1(x)).

    x: (..., hidden_size), any float dtype.  Returns (..., num_classes) f32.
    Eval mode (training=False): dropout is the identity, as in PyTorch.
    """
    lead = x.shape[:-1]
    hidden = x.shape[-1]
    Kp, Np = w_kn.shape
    M = 1
    for d in lead:
        M *= d

    apply_dropout = bool(training) and float(drop_rate) > 0.0
    if apply_dropout and float(drop_rate) >= 1.0:
        # PyTorch zeroes everything for p == 1 (avoid 1/(1-p) = inf).
        return jnp.zeros(lead + (num_classes,), jnp.float32)

    # M tiling: pad only to a sublane group (8); split into >=2 tiles when
    # possible so both v7x TensorCores get work; cap tile rows at 512.
    tm_max = 512
    Mp8 = _round_up(max(M, 8), 8)
    n_tiles = -(-Mp8 // tm_max)
    if Mp8 >= 16:
        n_tiles = max(n_tiles, 2)
    tm = _round_up(-(-Mp8 // n_tiles), 8)
    Mp = tm * n_tiles

    # Single pass over x: cast straight to bf16 and pad (fuses under jit).
    x2d = x.reshape(M, hidden)
    x_p = jnp.pad(x2d.astype(jnp.bfloat16), ((0, Mp - M), (0, Kp - hidden)))
    seed_arr = jnp.asarray(seed, dtype=jnp.int32).reshape(1)

    out = _linear_dropout_call(Mp, Kp, Np, tm, float(drop_rate),
                               apply_dropout)(seed_arr, x_p, w_kn, b_row)
    return out[:M, :num_classes].reshape(lead + (num_classes,))


if __name__ == "__main__":
    num_classes, hidden_size, drop_rate = 10, 32, 0.5
    key = jax.random.PRNGKey(0)
    x = jax.random.normal(key, (2, 8, hidden_size), jnp.float32)
    params = make_label_cl_params(num_classes, hidden_size, seed=0)
    w_kn, b_row = prep_label_cl_params(params)      # one-time weight prep

    # Eval mode (dropout == identity): compare with pure-JAX reference.
    y_eval = label_cl_forward(x, w_kn, b_row, 0, num_classes=num_classes,
                              drop_rate=drop_rate, training=False)
    y_eval = jax.block_until_ready(y_eval)
    ref = (x.reshape(-1, hidden_size) @ params["weight"].T + params["bias"]
           ).reshape(2, 8, num_classes)
    assert y_eval.shape == (2, 8, num_classes), y_eval.shape
    assert bool(jnp.all(jnp.isfinite(y_eval)))
    max_err = float(jnp.max(jnp.abs(y_eval - ref)))
    assert max_err < 5e-2, max_err   # bf16-input / f32-accum tolerance

    # Training mode: fused in-kernel dropout (counter-hash PRNG stream differs
    # from torch's RNG, but semantics — Bernoulli keep, 1/(1-p) scaling — match).
    y_train = label_cl_forward(x, w_kn, b_row, 123, num_classes=num_classes,
                               drop_rate=drop_rate, training=True)
    y_train = jax.block_until_ready(y_train)
    assert y_train.shape == (2, 8, num_classes), y_train.shape
    assert bool(jnp.all(jnp.isfinite(y_train)))
    kept = y_train != 0
    frac_kept = float(jnp.mean(kept.astype(jnp.float32)))
    assert 0.1 < frac_kept < 0.9, frac_kept
    # Kept elements are exactly the eval logits scaled by 1/(1-p) = 2.
    scaled_err = float(jnp.max(jnp.abs(
        jnp.where(kept, y_train - 2.0 * y_eval, 0.0))))
    assert scaled_err < 1e-4, scaled_err

    print("KERNEL_OK")
</pallas_src>

<mosaic_0001>
module attributes {stable_mosaic.version = 11 : i64} {
  func.func @_linear_dropout_kernel(%arg0: i32, %arg1: memref<1xi32, #tpu.memory_space<smem>>, %arg2: memref<8x128xbf16, #tpu.memory_space<vmem>>, %arg3: memref<128x128xbf16, #tpu.memory_space<vmem>>, %arg4: memref<1x128xf32, #tpu.memory_space<vmem>>, %arg5: memref<8x128xf32, #tpu.memory_space<vmem>>) attributes {dimension_semantics = [#tpu.dimension_semantics<parallel>], iteration_bounds = array<i64: 2>, scalar_prefetch = 1 : i64, scratch_operands = 0 : i64, tpu.core_type = #tpu.core_type<tc>, window_params = [{transform_indices = @transform_0, window_bounds = array<i64: 8, 128>}, {pipeline_mode = #tpu.pipeline_mode<synchronous>, transform_indices = @transform_1, window_bounds = array<i64: 128, 128>}, {pipeline_mode = #tpu.pipeline_mode<synchronous>, transform_indices = @transform_2, window_bounds = array<i64: 1, 128>}, {transform_indices = @transform_3, window_bounds = array<i64: 8, 128>}]} {
    %c0 = arith.constant 0 : index
    %c0_0 = arith.constant 0 : index
    %0 = vector.load %arg2[%c0, %c0_0] : memref<8x128xbf16, #tpu.memory_space<vmem>>, vector<8x128xbf16>
    %c0_1 = arith.constant 0 : index
    %c0_2 = arith.constant 0 : index
    %1 = vector.load %arg3[%c0_1, %c0_2] : memref<128x128xbf16, #tpu.memory_space<vmem>>, vector<128x128xbf16>
    %cst = arith.constant dense<0.000000e+00> : vector<8x128xf32>
    %2 = tpu.matmul %0, %1, %cst {dimension_numbers = #tpu.dot_dimension_numbers<[1], [0], [0], [1], [0, 0, 1, 1], [], []>} : vector<8x128xbf16>, vector<128x128xbf16>, vector<8x128xf32> -> vector<8x128xf32>
    %c0_3 = arith.constant 0 : index
    %c0_4 = arith.constant 0 : index
    %3 = vector.load %arg4[%c0_3, %c0_4] : memref<1x128xf32, #tpu.memory_space<vmem>>, vector<1x128xf32>
    %4 = vector.broadcast %3 : vector<1x128xf32> to vector<8x128xf32>
    %5 = arith.addf %2, %4 : vector<8x128xf32>
    %c0_5 = arith.constant 0 : index
    %c0_6 = arith.constant 0 : index
    %6 = vector.load %arg5[%c0_5, %c0_6] : memref<8x128xf32, #tpu.memory_space<vmem>>, vector<8x128xf32>
    tpu.vector_store %arg5[%c0_5, %c0_6], %5 {strides = array<i32>} : memref<8x128xf32, #tpu.memory_space<vmem>>, vector<8x128xf32>,
    return
  }
  func.func @transform_0(%arg0: i32, %arg1: memref<1xi32, #tpu.memory_space<smem>>) -> (i32, i32) {
    %c0_i32 = arith.constant 0 : i32
    %c0_i32_0 = arith.constant 0 : i32
    return %arg0, %c0_i32 : i32, i32
  }
  func.func @transform_1(%arg0: i32, %arg1: memref<1xi32, #tpu.memory_space<smem>>) -> (i32, i32) {
    %c0_i32 = arith.constant 0 : i32
    %c0_i32_0 = arith.constant 0 : i32
    %c0_i32_1 = arith.constant 0 : i32
    return %c0_i32, %c0_i32_0 : i32, i32
  }
  func.func @transform_2(%arg0: i32, %arg1: memref<1xi32, #tpu.memory_space<smem>>) -> (i32, i32) {
    %c0_i32 = arith.constant 0 : i32
    %c0_i32_0 = arith.constant 0 : i32
    %c0_i32_1 = arith.constant 0 : i32
    return %c0_i32, %c0_i32_0 : i32, i32
  }
  func.func @transform_3(%arg0: i32, %arg1: memref<1xi32, #tpu.memory_space<smem>>) -> (i32, i32) {
    %c0_i32 = arith.constant 0 : i32
    %c0_i32_0 = arith.constant 0 : i32
    return %arg0, %c0_i32 : i32, i32
  }
}

</mosaic_0001>

<bundles_post_ra>
// kernel: label_cl_forward.1
= control target key start
LH: loop header
LB: loop body
LE: loop exit
PB: predicated region body
PF: predicated region fallthrough
CT: control target
= control target key end

     0   :  { %10 = vsyncpa [#allocation5], 0  ;;  %s512_s15 = smov 0   ;;  %s571_s0 = inlined_call_operand.<no memory space> [shape: s32[1], index: 0, kind: input, shape index: {}]   ;;  %s572_s1 = inlined_call_operand.vmem [shape: bf16[16,128], index: 1, kind: input, shape index: {}]   ;;  %s573_s2 = inlined_call_operand.hbm [shape: bf16[128,128], index: 2, kind: input, shape index: {}]   ;;  %s574_s3 = inlined_call_operand.vmem [shape: f32[1,128], index: 3, kind: input, shape index: {}]   ;;  %s575_s4 = inlined_call_operand.vmem [shape: f32[16,128], index: 4, kind: output, shape index: {}]  }
   0x1 LB: > { %s518_s0 = sadd.s32 4294967295, %s480_s15   ;;  %p364_p0 = scmp.ge.s32.totalorder %s480_s15, 1  ;;  %s480_s15 = sphi %s512_s15, %s16_s15  }
   0x2   : > { %p115_p1 = scmp.lt.s32.totalorder %s480_s15, 3  ;;  %s482_s16 = smov [#allocation4]  }
   0x3   : > { %s127_s17 = sshll.u32 %s482_s16, 4  ;;  %p576_p3 = scmp.eq.s32.totalorder %s518_s0, 0  ;;  %s128_s17 = int_to_ptr.vmem [resolvable:$true] %s127_s17 }
   0x4   : > { %p522_p2 = pnand %p364_p0, %p115_p1  ;;  %s442_s22 = scalar_lea.hbm %s573_s2, 1024 }
   0x5   : > { %p443_p6 = scmp.ne.s32.totalorder %s573_s2, %s442_s22  ;;  %p449_p10 = scmp.lt.u32.totalorder %s442_s22, %s573_s2 }
   0x6   : > { %s578_s18 = scalar_select %p522_p2, 1, 0 }
   0x7   : > { %p415_p4 = pneg %p522_p2 }
   0x9   : > { %p531_p5 = pnand %p576_p3, %p415_p4 }
   0xb   : > { %p444_p7 = pneg %p531_p5 }
   0xd   : > { %p445_p8 = pnand %p444_p7, %p443_p6 }
   0xf   : > { %p446_p9 = pneg %p445_p8 }
  0x11   : > { %p451_p11 = pnand %p449_p10, %p446_p9 }
  0x13   : > { %454 = shalt.err (!%p451_p11)
}
  0x14   : > { %s455_s27 = scalar_lea.vmem %s128_s17, 1024  ;;  %p463_p1 = scmp.lt.s32.totalorder %s128_s17, %s128_s17 }
  0x15   : > { %p456_p12 = scmp.ne.s32.totalorder %s128_s17, %s455_s27  ;;  %p464_p4 = scmp.lt.s32.totalorder %s455_s27, %s455_s27 }
  0x17   : > { %p458_p13 = pnand %p456_p12, %p444_p7  ;;  %p465_p3 = por %p464_p4, %p463_p1 }
  0x19   : > { %p459_p0 = pneg %p458_p13 }
  0x1b   : > { %p466_p2 = pnand %p465_p3, %p459_p0 }
  0x1d   : > { %469 = shalt.err (!%p466_p2)
}
  0x1e   : > { %s483_s28 = smov 64   ;;  %s484_s29 = smov 4  }
  0x1f   : > { %418 = dma.hbm_to_vmem [thread:$0]  (!%p531_p5), %s573_s2, 1024, %s128_s17, [#allocation5], %s483_s28, %s483_s28, %s484_s29  }
  0x20   : > { %p580_p6 = scmp.ne.s32.totalorder %s578_s18, 0 }
  0x21   : > { %p581_p8 = scmp.eq.s32.totalorder (!%p580_p6), %s518_s0, 0 }
  0x22   : > { %153 = sbr.rel (%p580_p6) target bundleno = 290 (0x122), region = 32 }
  0x29   : > { %475 = dma.done.wait (%p581_p8), [#allocation5], 1024   ;;  %p582_p7 = pmov %p581_p8 }
  0x2a   : > { %v485_v0 = vmov 0.0   ;;  %vm486_vm0 = vmmov 0   ;;  %v434_v1 = vld [vmem:[#allocation4] sm:$0xff]   ;;  %v435_v2 = vld [vmem:[#allocation4 + $0x8] sm:$0xff]   ;;  %v436_v3 = vld [vmem:[#allocation4 + $0x10] sm:$0xff]   ;;  %p175_p2 = scmp.lt.s32.totalorder %s518_s0, 1 }
  0x2b   : > { %477 = vsyncadd (%p582_p7), [#allocation5], 4294966272  ;;  %391 = vmatprep.subr.bf16.mxu0 %v485_v0  ;;  %407 = vmatprep.mubr.msk.bf16.mxu0 %vm486_vm0, %v485_v0  ;;  %v437_v4 = vld [vmem:[#allocation4 + $0x18] sm:$0xff]   ;;  %v438_v5 = vld [vmem:[#allocation4 + $0x20] sm:$0xff]  }
  0x2c   : > { %392 = vmatpush3.bf16.msra.mxu0 %v434_v1  ;;  %v439_v6 = vld [vmem:[#allocation4 + $0x28] sm:$0xff]   ;;  %s584_s0 = smov (!%p175_p2, %s518_s0), 1  ;;  %v440_v7 = vld [vmem:[#allocation4 + $0x30] sm:$0xff]   ;;  %v441_v8 = vld [vmem:[#allocation4 + $0x38] sm:$0xff]  }
  0x2d   : > { %393 = vmatprep.subr.bf16.mxu0 %v485_v0  ;;  %s369_s6 = sshll.u32 %s584_s0, 2  ;;  %s370_s10 = sshll.u32 %s584_s0, 3  ;;  %v371_v10 = vld [vmem:[%s574_s3] ss:$0 sm:$0xff] }
  0x2e   : > { %s178_s9 = scalar_lea.vmem %s572_s1, %s369_s6  ;;  %s182_s16 = scalar_lea.vmem %s575_s4, %s370_s10 }
  0x2f   : > { %v184_v9 = vld [vmem:[%s178_s9] sm:$0xf] }
  0x30   : > { %394 = vmatpush3.bf16.msra.mxu0 %v435_v2 }
  0x31   : > { %395 = vmatprep.subr.bf16.mxu0 %v485_v0 }
  0x34   : > { %396 = vmatpush3.bf16.msra.mxu0 %v436_v3 }
  0x35   : > { %397 = vmatprep.subr.bf16.mxu0 %v485_v0 }
  0x38   : > { %398 = vmatpush3.bf16.msra.mxu0 %v437_v4 }
  0x39   : > { %399 = vmatprep.subr.bf16.mxu0 %v485_v0 }
  0x3c   : > { %400 = vmatpush3.bf16.msra.mxu0 %v438_v5 }
  0x3d   : > { %401 = vmatprep.subr.bf16.mxu0 %v485_v0 }
  0x40   : > { %402 = vmatpush3.bf16.msra.mxu0 %v439_v6 }
  0x41   : > { %403 = vmatprep.subr.bf16.mxu0 %v485_v0 }
  0x44   : > { %404 = vmatpush3.bf16.msra.mxu0 %v440_v7 }
  0x45   : > { %405 = vmatprep.subr.bf16.mxu0 %v485_v0 }
  0x48   : > { %406 = vmatpush3.bf16.msra.mxu0 %v441_v8 }
  0x4b   : > { %408 = vmatmul.mubr.bf16.vlgmr.msra.gmra.mrb[0].mxu0 %v184_v9 }
 0x11e   : > { %v290_v11 = vpop.f32.mrb[0].mxu0 }
 0x11f   : > { %v291_v12 = vadd.f32 %v371_v10, %v290_v11  ;;  %v409_v13 = vpop.f32.mrb[1].mxu0 }
 0x120   : > { %v293_v14 = vpop.f32.mrb[2].mxu0 }
 0x121   : > { %296 = vst [vmem:[%s182_s16] sm:$0xff] %v291_v12  ;;  %v410_v15 = vpop.f32.mrb[3].mxu0 }
 0x122 PF: > { %s16_s15 = sadd.s32 1, %s480_s15  }
 0x123   : > { %p13_p3 = scmp.ge.s32.totalorder %s16_s15, 4  }
 0x125   :  { %15 = sbr.rel (!%p13_p3) target bundleno = 1 (0x1), region = 67 }
 0x12c   :  { %316 = vsyncpa [#allocation5], 1 }
 0x12d   :  { %318 = vsyncpa [#allocation5 + $0x1], 1 }

</bundles_post_ra>
